<compile_context>
chip_gen: v7x
topology: tpu7x:2x2x1
jax: 0.10.0
libtpu: 0.0.40
codegen_flags: <defaults>
</compile_context>

<pallas_src>
import jax
import jax.numpy as jnp
from jax import lax
from jax.experimental import pallas as pl
from jax.experimental.pallas import tpu as pltpu

NEG_SLOPE = 0.01  # PyTorch nn.LeakyReLU default negative_slope (assumed for LRConv)


def _ynet2hd2_kernel(x0_ref, x1_ref, w1_ref, w2a_ref, w2b_ref, b_ref, o_ref):
    x0 = x0_ref[0]                                # (4*C0, t) bf16 im2col patches
    x1 = x1_ref[0].astype(jnp.bfloat16)           # (C1, t)  cast on VPU, read f32 once

    # h1 = Conv2d(128,128,k=2,s=2): patches already gathered -> single MXU matmul.
    h1 = jnp.dot(w1_ref[...], x0, preferred_element_type=jnp.float32)      # (Cmid, t) f32

    # cat([x1, h1], channel) @ W2  ==  W2a @ x1 + W2b @ h1   (channels-first)
    y = jnp.dot(w2a_ref[...], x1, preferred_element_type=jnp.float32)
    y = y + jnp.dot(w2b_ref[...], h1.astype(jnp.bfloat16),
                    preferred_element_type=jnp.float32)
    y = y + b_ref[...]                            # (Cout, 1) broadcast; b1 already folded in

    # LeakyReLU, write directly in NCHW (channels-first) layout.
    o_ref[0] = jnp.where(y >= 0, y, NEG_SLOPE * y).astype(o_ref.dtype)


def ynet2hd2_forward(x0, x1, w1, b1, w2, b2, *, tile_hw=1024):
    """x0: (N,128,2H,2W) f32, x1: (N,192,H,W) f32 -> (N,192,H,W) f32 (NCHW)."""
    N, C0, H2, W2d = x0.shape
    H, W = H2 // 2, W2d // 2
    C1 = x1.shape[1]            # 192
    Cmid = w1.shape[0]          # 128
    Cout = w2.shape[0]          # 192
    HW = H * W

    # im2col for k=2/s=2, channels-first, patch order (dy, dx, ci); bf16 cast is
    # fused into the same XLA transpose so x0 crosses HBM at half width afterwards.
    x0r = (x0.reshape(N, C0, H, 2, W, 2)
              .transpose(0, 3, 5, 1, 2, 4)
              .reshape(N, 4 * C0, HW)
              .astype(jnp.bfloat16))
    x1r = x1.reshape(N, C1, HW)                      # free view of NCHW, stays f32

    # Weight prep (bf16 for the MXU); bias of the first conv folded into the output bias.
    w1m = w1.transpose(0, 2, 3, 1).reshape(Cmid, 4 * C0).astype(jnp.bfloat16)  # (128, 512)
    w2m = w2.reshape(Cout, C1 + Cmid)                                          # (192, 320) f32
    w2a = w2m[:, :C1].astype(jnp.bfloat16)           # multiplies x[1] part   (192, 192)
    w2b = w2m[:, C1:].astype(jnp.bfloat16)           # multiplies h1 part     (192, 128)
    bias_eff = (w2m[:, C1:] @ b1 + b2).reshape(Cout, 1).astype(jnp.float32)    # f32, exact fold

    # Spatial tiling: full extent if small, otherwise 128-aligned tiles + zero padding.
    t = min(tile_hw, HW)
    if t < HW:
        t = max(128, (t // 128) * 128)
    HW_pad = t * pl.cdiv(HW, t)
    if HW_pad != HW:
        pad = HW_pad - HW
        x0r = jnp.pad(x0r, ((0, 0), (0, 0), (0, pad)))
        x1r = jnp.pad(x1r, ((0, 0), (0, 0), (0, pad)))

    grid = (N, HW_pad // t)

    out = pl.pallas_call(
        _ynet2hd2_kernel,
        out_shape=jax.ShapeDtypeStruct((N, Cout, HW_pad), jnp.float32),
        grid_spec=pltpu.PrefetchScalarGridSpec(
            num_scalar_prefetch=0,
            grid=grid,
            in_specs=[
                pl.BlockSpec((1, 4 * C0, t), lambda n, j: (n, 0, j)),   # x0 patches (bf16)
                pl.BlockSpec((1, C1, t),     lambda n, j: (n, 0, j)),   # x1 NCHW view (f32)
                pl.BlockSpec((Cmid, 4 * C0), lambda n, j: (0, 0)),      # W1 (bf16)
                pl.BlockSpec((Cout, C1),     lambda n, j: (0, 0)),      # W2[:, :192] (bf16)
                pl.BlockSpec((Cout, Cmid),   lambda n, j: (0, 0)),      # W2[:, 192:] (bf16)
                pl.BlockSpec((Cout, 1),      lambda n, j: (0, 0)),      # folded bias (f32)
            ],
            out_specs=pl.BlockSpec((1, Cout, t), lambda n, j: (n, 0, j)),
        ),
        compiler_params=pltpu.CompilerParams(
            dimension_semantics=("parallel", "parallel")),
    )(x0r, x1r, w1m, w2a, w2b, bias_eff)

    if HW_pad != HW:
        out = out[:, :, :HW]
    return out.reshape(N, Cout, H, W)                # already NCHW — no transpose needed


def _reference(x0, x1, w1, b1, w2, b2):
    """Pure-JAX f32 reference of the assumed forward pass (for correctness check)."""
    h1 = lax.conv_general_dilated(
        x0, w1, window_strides=(2, 2), padding="VALID",
        dimension_numbers=("NCHW", "OIHW", "NCHW")) + b1.reshape(1, -1, 1, 1)
    cat = jnp.concatenate([x1, h1], axis=1)
    y = lax.conv_general_dilated(
        cat, w2, window_strides=(1, 1), padding="VALID",
        dimension_numbers=("NCHW", "OIHW", "NCHW")) + b2.reshape(1, -1, 1, 1)
    return jnp.where(y >= 0, y, NEG_SLOPE * y)


if __name__ == "__main__":
    key = jax.random.PRNGKey(0)
    k0, k1, kw1, kb1, kw2, kb2 = jax.random.split(key, 6)

    # Small shapes consistent with the module: channels fixed by Ynet2Hd2.
    N, H, W = 2, 8, 8
    x0 = jax.random.normal(k0, (N, 128, 2 * H, 2 * W), dtype=jnp.float32)  # input to h1
    x1 = jax.random.normal(k1, (N, 192, H, W), dtype=jnp.float32)          # skip branch

    # Deterministic synthetic parameters (torch Conv2d weight layout: OIHW).
    w1 = 0.05 * jax.random.normal(kw1, (128, 128, 2, 2), dtype=jnp.float32)
    b1 = 0.05 * jax.random.normal(kb1, (128,), dtype=jnp.float32)
    w2 = 0.05 * jax.random.normal(kw2, (192, 320, 1, 1), dtype=jnp.float32)
    b2 = 0.05 * jax.random.normal(kb2, (192,), dtype=jnp.float32)

    out = ynet2hd2_forward(x0, x1, w1, b1, w2, b2)
    out = jax.block_until_ready(out)

    ref = jax.block_until_ready(_reference(x0, x1, w1, b1, w2, b2))
    assert out.shape == (N, 192, H, W), out.shape
    # Tolerance accounts for the intentional bf16 MXU path (f32 accumulation).
    assert jnp.allclose(out, ref, atol=5e-2, rtol=5e-2), float(jnp.max(jnp.abs(out - ref)))

    print("KERNEL_OK")
</pallas_src>

<mosaic_0001>
module attributes {stable_mosaic.version = 11 : i64} {
  func.func @_ynet2hd2_kernel(%arg0: i32, %arg1: i32, %arg2: memref<1x512x64xbf16, #tpu.memory_space<vmem>>, %arg3: memref<1x192x64xf32, #tpu.memory_space<vmem>>, %arg4: memref<128x512xbf16, #tpu.memory_space<vmem>>, %arg5: memref<192x192xbf16, #tpu.memory_space<vmem>>, %arg6: memref<192x128xbf16, #tpu.memory_space<vmem>>, %arg7: memref<192x1xf32, #tpu.memory_space<vmem>>, %arg8: memref<1x192x64xf32, #tpu.memory_space<vmem>>) attributes {dimension_semantics = [#tpu.dimension_semantics<parallel>, #tpu.dimension_semantics<parallel>], iteration_bounds = array<i64: 2, 1>, scalar_prefetch = 0 : i64, scratch_operands = 0 : i64, tpu.core_type = #tpu.core_type<tc>, window_params = [{transform_indices = @transform_0, window_bounds = array<i64: 1, 512, 64>}, {transform_indices = @transform_1, window_bounds = array<i64: 1, 192, 64>}, {pipeline_mode = #tpu.pipeline_mode<synchronous>, transform_indices = @transform_2, window_bounds = array<i64: 128, 512>}, {pipeline_mode = #tpu.pipeline_mode<synchronous>, transform_indices = @transform_3, window_bounds = array<i64: 192, 192>}, {pipeline_mode = #tpu.pipeline_mode<synchronous>, transform_indices = @transform_4, window_bounds = array<i64: 192, 128>}, {pipeline_mode = #tpu.pipeline_mode<synchronous>, transform_indices = @transform_5, window_bounds = array<i64: 192, 1>}, {transform_indices = @transform_6, window_bounds = array<i64: 1, 192, 64>}]} {
    %c0 = arith.constant 0 : index
    %c0_0 = arith.constant 0 : index
    %c0_1 = arith.constant 0 : index
    %0 = vector.load %arg2[%c0, %c0_0, %c0_1] : memref<1x512x64xbf16, #tpu.memory_space<vmem>>, vector<1x512x64xbf16>
    %1 = vector.shape_cast %0 : vector<1x512x64xbf16> to vector<512x64xbf16>
    %c0_2 = arith.constant 0 : index
    %c0_3 = arith.constant 0 : index
    %c0_4 = arith.constant 0 : index
    %2 = vector.load %arg3[%c0_2, %c0_3, %c0_4] : memref<1x192x64xf32, #tpu.memory_space<vmem>>, vector<1x192x64xf32>
    %3 = vector.shape_cast %2 : vector<1x192x64xf32> to vector<192x64xf32>
    %4 = arith.truncf %3 : vector<192x64xf32> to vector<192x64xbf16>
    %c0_5 = arith.constant 0 : index
    %c0_6 = arith.constant 0 : index
    %5 = vector.load %arg4[%c0_5, %c0_6] : memref<128x512xbf16, #tpu.memory_space<vmem>>, vector<128x512xbf16>
    %cst = arith.constant dense<0.000000e+00> : vector<128x64xf32>
    %6 = tpu.matmul %5, %1, %cst {dimension_numbers = #tpu.dot_dimension_numbers<[1], [0], [0], [1], [0, 0, 1, 1], [], []>} : vector<128x512xbf16>, vector<512x64xbf16>, vector<128x64xf32> -> vector<128x64xf32>
    %c0_7 = arith.constant 0 : index
    %c0_8 = arith.constant 0 : index
    %7 = vector.load %arg5[%c0_7, %c0_8] : memref<192x192xbf16, #tpu.memory_space<vmem>>, vector<192x192xbf16>
    %cst_9 = arith.constant dense<0.000000e+00> : vector<192x64xf32>
    %8 = tpu.matmul %7, %4, %cst_9 {dimension_numbers = #tpu.dot_dimension_numbers<[1], [0], [0], [1], [0, 0, 1, 1], [], []>} : vector<192x192xbf16>, vector<192x64xbf16>, vector<192x64xf32> -> vector<192x64xf32>
    %c0_10 = arith.constant 0 : index
    %c0_11 = arith.constant 0 : index
    %9 = vector.load %arg6[%c0_10, %c0_11] : memref<192x128xbf16, #tpu.memory_space<vmem>>, vector<192x128xbf16>
    %10 = arith.truncf %6 : vector<128x64xf32> to vector<128x64xbf16>
    %cst_12 = arith.constant dense<0.000000e+00> : vector<192x64xf32>
    %11 = tpu.matmul %9, %10, %cst_12 {dimension_numbers = #tpu.dot_dimension_numbers<[1], [0], [0], [1], [0, 0, 1, 1], [], []>} : vector<192x128xbf16>, vector<128x64xbf16>, vector<192x64xf32> -> vector<192x64xf32>
    %12 = arith.addf %8, %11 : vector<192x64xf32>
    %c0_13 = arith.constant 0 : index
    %c0_14 = arith.constant 0 : index
    %13 = vector.load %arg7[%c0_13, %c0_14] : memref<192x1xf32, #tpu.memory_space<vmem>>, vector<192x1xf32>
    %14 = vector.broadcast %13 : vector<192x1xf32> to vector<192x64xf32>
    %15 = arith.addf %12, %14 : vector<192x64xf32>
    %cst_15 = arith.constant 0.000000e+00 : f32
    %16 = vector.broadcast %cst_15 : f32 to vector<192x64xf32>
    %17 = arith.cmpf oge, %15, %16 : vector<192x64xf32>
    %cst_16 = arith.constant 0.00999999977 : f32
    %18 = vector.broadcast %cst_16 : f32 to vector<192x64xf32>
    %19 = arith.mulf %18, %15 : vector<192x64xf32>
    %20 = arith.select %17, %15, %19 : vector<192x64xi1>, vector<192x64xf32>
    %c0_17 = arith.constant 0 : index
    %c0_18 = arith.constant 0 : index
    %c0_19 = arith.constant 0 : index
    %21 = vector.load %arg8[%c0_17, %c0_18, %c0_19] : memref<1x192x64xf32, #tpu.memory_space<vmem>>, vector<1x192x64xf32>
    %22 = vector.shape_cast %21 : vector<1x192x64xf32> to vector<192x64xf32>
    %23 = vector.shape_cast %20 : vector<192x64xf32> to vector<1x192x64xf32>
    tpu.vector_store %arg8[%c0_17, %c0_18, %c0_19], %23 {strides = array<i32>} : memref<1x192x64xf32, #tpu.memory_space<vmem>>, vector<1x192x64xf32>,
    return
  }
  func.func @transform_0(%arg0: i32, %arg1: i32) -> (i32, i32, i32) {
    %c0_i32 = arith.constant 0 : i32
    %c0_i32_0 = arith.constant 0 : i32
    return %arg0, %c0_i32, %arg1 : i32, i32, i32
  }
  func.func @transform_1(%arg0: i32, %arg1: i32) -> (i32, i32, i32) {
    %c0_i32 = arith.constant 0 : i32
    %c0_i32_0 = arith.constant 0 : i32
    return %arg0, %c0_i32, %arg1 : i32, i32, i32
  }
  func.func @transform_2(%arg0: i32, %arg1: i32) -> (i32, i32) {
    %c0_i32 = arith.constant 0 : i32
    %c0_i32_0 = arith.constant 0 : i32
    %c0_i32_1 = arith.constant 0 : i32
    return %c0_i32, %c0_i32_0 : i32, i32
  }
  func.func @transform_3(%arg0: i32, %arg1: i32) -> (i32, i32) {
    %c0_i32 = arith.constant 0 : i32
    %c0_i32_0 = arith.constant 0 : i32
    %c0_i32_1 = arith.constant 0 : i32
    return %c0_i32, %c0_i32_0 : i32, i32
  }
  func.func @transform_4(%arg0: i32, %arg1: i32) -> (i32, i32) {
    %c0_i32 = arith.constant 0 : i32
    %c0_i32_0 = arith.constant 0 : i32
    %c0_i32_1 = arith.constant 0 : i32
    return %c0_i32, %c0_i32_0 : i32, i32
  }
  func.func @transform_5(%arg0: i32, %arg1: i32) -> (i32, i32) {
    %c0_i32 = arith.constant 0 : i32
    %c0_i32_0 = arith.constant 0 : i32
    %c0_i32_1 = arith.constant 0 : i32
    return %c0_i32, %c0_i32_0 : i32, i32
  }
  func.func @transform_6(%arg0: i32, %arg1: i32) -> (i32, i32, i32) {
    %c0_i32 = arith.constant 0 : i32
    %c0_i32_0 = arith.constant 0 : i32
    return %arg0, %c0_i32, %arg1 : i32, i32, i32
  }
}

</mosaic_0001>

<bundles_post_ra>
// kernel: tpu_custom_call.1
= control target key start
LH: loop header
LB: loop body
LE: loop exit
PB: predicated region body
PF: predicated region fallthrough
CT: control target
= control target key end

     0   :  { %s2441_s21 = smov 0   ;;  %s2443_s22 = smov 0   ;;  %s3041_s0 = inlined_call_operand.vmem [shape: bf16[2,512,64], index: 0, kind: input, shape index: {}]   ;;  %s3042_s1 = inlined_call_operand.vmem [shape: f32[2,192,64], index: 1, kind: input, shape index: {}]   ;;  %s3043_s2 = inlined_call_operand.vmem [shape: bf16[128,512], index: 2, kind: input, shape index: {}]   ;;  %s3044_s3 = inlined_call_operand.vmem [shape: bf16[192,192], index: 3, kind: input, shape index: {}]   ;;  %s3045_s4 = inlined_call_operand.vmem [shape: bf16[192,128], index: 4, kind: input, shape index: {}]   ;;  %s3046_s5 = inlined_call_operand.vmem [shape: f32[192,1], index: 5, kind: input, shape index: {}]   ;;  %s3047_s6 = inlined_call_operand.vmem [shape: f32[2,192,64], index: 6, kind: output, shape index: {}]  }
   0x1   :  { %s2445_s23 = smov 0  }
   0x2 LB: > { %s28_s24 = sadd.s32 1, %s2399_s22  ;;  %p1893_p0 = scmp.ge.s32.totalorder %s2403_s23, 1  ;;  %s2403_s23 = sphi %s2445_s23, %s16_s23   ;;  %s2399_s22 = sphi %s2443_s22, %s3049_s22   ;;  %s2395_s21 = sphi %s2441_s21, %s3048_s21  }
   0x3   : > { %p30_p1 = scmp.ge.s32.totalorder %s28_s24, 2  ;;  %p246_p2 = scmp.lt.s32.totalorder %s2403_s23, 3 }
   0x5   : > { %s3051_s24 = smov (%p30_p1, %s28_s24), 0  ;;  %p247_p3 = pnand %p1893_p0, %p246_p2 }
   0x6   : > { %p290_p4 = scmp.lt.s32.totalorder (!%p247_p3), %s2395_s21, 1  ;;  %v2287_v0 = vld [vmem:[%s3043_s2 + $0x4] ss:$16 sps:$4 sm:$0xff] (!%p247_p3)   ;;  %v2405_v1 = vmov (!%p247_p3), 0   ;;  %v2290_v2 = vld [vmem:[%s3043_s2 + $0xc] ss:$16 sps:$4 sm:$0xff] (!%p247_p3)  }
   0x7   : > { %250 = sbr.rel (%p247_p3) target bundleno = 619 (0x26b), region = 44  ;;  %2252 = vset.pattern.permute.xlu1 (!%p247_p3), %v2405_v1  ;;  %2251 = vset.pattern.permute.xlu0 (!%p247_p3), %v2405_v1  ;;  %v2285_v33 = vld [vmem:[%s3043_s2] ss:$16 sps:$4 sm:$0xff] (!%p247_p3)   ;;  %v2288_v35 = vld [vmem:[%s3043_s2 + $0x8] ss:$16 sps:$4 sm:$0xff] (!%p247_p3)   ;;  %vm1358_vm0 = vcmask (!%p247_p3), 523264  }
   0x8   : > { %831 = vmatprep.mubr.bf16.mxu0 (!%p247_p3), %v2287_v0  ;;  %928 = vmatprep.mubr.bf16.mxu1 (!%p247_p3), %v2290_v2  ;;  %v2291_v37 = vld [vmem:[%s3043_s2 + $0x24] ss:$16 sps:$4 sm:$0xff] (!%p247_p3)   ;;  %v2293_v38 = vld [vmem:[%s3043_s2 + $0x2c] ss:$16 sps:$4 sm:$0xff] (!%p247_p3)   ;;  %v2295_v39 = vld [vmem:[%s3043_s2 + $0x20] ss:$16 sps:$4 sm:$0xff] (!%p247_p3)  }
   0x9   : > { %v2296_v40 = vld [vmem:[%s3043_s2 + $0x28] ss:$16 sps:$4 sm:$0xff] (!%p247_p3)   ;;  %v2297_v41 = vld [vmem:[%s3043_s2 + $0x44] ss:$16 sps:$4 sm:$0xff] (!%p247_p3)   ;;  %v2299_v42 = vld [vmem:[%s3043_s2 + $0x4c] ss:$16 sps:$4 sm:$0xff] (!%p247_p3)  }
   0xa   : > { %v2301_v43 = vld [vmem:[%s3043_s2 + $0x40] ss:$16 sps:$4 sm:$0xff] (!%p247_p3)   ;;  %v2302_v44 = vld [vmem:[%s3043_s2 + $0x48] ss:$16 sps:$4 sm:$0xff] (!%p247_p3)   ;;  %v2303_v45 = vld [vmem:[%s3043_s2 + $0x64] ss:$16 sps:$4 sm:$0xff] (!%p247_p3)  }
   0xb   : > { %v2305_v46 = vld [vmem:[%s3043_s2 + $0x6c] ss:$16 sps:$4 sm:$0xff] (!%p247_p3)   ;;  %v2307_v50 = vld [vmem:[%s3043_s2 + $0x60] ss:$16 sps:$4 sm:$0xff] (!%p247_p3)   ;;  %v2308_v51 = vld [vmem:[%s3043_s2 + $0x68] ss:$16 sps:$4 sm:$0xff] (!%p247_p3)  }
   0xc   : > { %v2309_v52 = vld [vmem:[%s3043_s2 + $0x84] ss:$16 sps:$4 sm:$0xff] (!%p247_p3)   ;;  %v2311_v53 = vld [vmem:[%s3043_s2 + $0x8c] ss:$16 sps:$4 sm:$0xff] (!%p247_p3)   ;;  %v2313_v54 = vld [vmem:[%s3043_s2 + $0x80] ss:$16 sps:$4 sm:$0xff] (!%p247_p3)  }
   0xd   : > { %v2314_v55 = vld [vmem:[%s3043_s2 + $0x88] ss:$16 sps:$4 sm:$0xff] (!%p247_p3)   ;;  %v2315_v56 = vld [vmem:[%s3043_s2 + $0xa4] ss:$16 sps:$4 sm:$0xff] (!%p247_p3)   ;;  %v2317_v57 = vld [vmem:[%s3043_s2 + $0xac] ss:$16 sps:$4 sm:$0xff] (!%p247_p3)  }
   0xe   : > { %s3053_s21 = smov (!%p290_p4, %s2395_s21), 1  ;;  %v2319_v58 = vld [vmem:[%s3043_s2 + $0xa0] ss:$16 sps:$4 sm:$0xff]   ;;  %v2320_v59 = vld [vmem:[%s3043_s2 + $0xa8] ss:$16 sps:$4 sm:$0xff]  }
   0xf   : > { %s2012_s29 = sshll.u32 %s3053_s21, 8  ;;  %s2225_s27 = smul.u32 192, %s3053_s21  ;;  %v2321_v60 = vld [vmem:[%s3043_s2 + $0xc4] ss:$16 sps:$4 sm:$0xff]   ;;  %v2323_v61 = vld [vmem:[%s3043_s2 + $0xcc] ss:$16 sps:$4 sm:$0xff]  }
  0x10   : > { %s2473_s8 = scalar_lea.vmem %s3041_s0, %s2012_s29  ;;  %v2325_v62 = vld [vmem:[%s3043_s2 + $0xc0] ss:$16 sps:$4 sm:$0xff]   ;;  %v2326_v63 = vld [vmem:[%s3043_s2 + $0xc8] ss:$16 sps:$4 sm:$0xff]   ;;  %v2327_v0 = vld [vmem:[%s3043_s2 + $0xe4] ss:$16 sps:$4 sm:$0xff]  }
  0x11   : > { %v2253_v3 = vld [vmem:[%s2473_s8 + $0x40] sm:$0xff]   ;;  %v2257_v7 = vld [vmem:[%s2473_s8 + $0x48] sm:$0xff]   ;;  %v2261_v11 = vld [vmem:[%s2473_s8 + $0x50] sm:$0xff]   ;;  %s2954_s29 = scalar_lea.vmem %s3047_s6, %s2225_s27 }
  0x12   : > { %v2254_v4 = vld [vmem:[%s2473_s8 + $0xc0] sm:$0xff]   ;;  %2013 = vmatprep.subr.bf16.mxu0 %v2253_v3  ;;  %v2258_v8 = vld [vmem:[%s2473_s8 + $0xc8] sm:$0xff]   ;;  %v2262_v12 = vld [vmem:[%s2473_s8 + $0xd0] sm:$0xff]  }
  0x13   : > { %v2255_v5 = vld [vmem:[%s2473_s8] sm:$0xff]   ;;  %2077 = vmatprep.subr.bf16.mxu1 %v2254_v4  ;;  %v2259_v9 = vld [vmem:[%s2473_s8 + $0x8] sm:$0xff]   ;;  %v2263_v13 = vld [vmem:[%s2473_s8 + $0x10] sm:$0xff]  }
  0x14   : > { %v2256_v6 = vld [vmem:[%s2473_s8 + $0x80] sm:$0xff]   ;;  %2014 = vmatpush3.bf16.msra.mxu0 %v2255_v5  ;;  %v2260_v10 = vld [vmem:[%s2473_s8 + $0x88] sm:$0xff]   ;;  %v2264_v14 = vld [vmem:[%s2473_s8 + $0x90] sm:$0xff]  }
  0x15   : > { %2078 = vmatpush3.bf16.msra.mxu1 %v2256_v6  ;;  %2015 = vmatprep.subr.bf16.mxu0 %v2257_v7  ;;  %v2265_v15 = vld [vmem:[%s2473_s8 + $0x58] sm:$0xff]   ;;  %v2269_v19 = vld [vmem:[%s2473_s8 + $0x60] sm:$0xff]   ;;  %v2273_v23 = vld [vmem:[%s2473_s8 + $0x68] sm:$0xff]  }
  0x16   : > { %2079 = vmatprep.subr.bf16.mxu1 %v2258_v8  ;;  %v2266_v16 = vld [vmem:[%s2473_s8 + $0xd8] sm:$0xff]   ;;  %v2270_v20 = vld [vmem:[%s2473_s8 + $0xe0] sm:$0xff]   ;;  %v2274_v24 = vld [vmem:[%s2473_s8 + $0xe8] sm:$0xff]  }
  0x17   : > { %v2267_v17 = vld [vmem:[%s2473_s8 + $0x18] sm:$0xff]   ;;  %v2271_v21 = vld [vmem:[%s2473_s8 + $0x20] sm:$0xff]   ;;  %v2275_v25 = vld [vmem:[%s2473_s8 + $0x28] sm:$0xff]  }
  0x18   : > { %2016 = vmatpush3.bf16.msra.mxu0 %v2259_v9  ;;  %v2268_v18 = vld [vmem:[%s2473_s8 + $0x98] sm:$0xff]   ;;  %v2272_v22 = vld [vmem:[%s2473_s8 + $0xa0] sm:$0xff]   ;;  %v2276_v26 = vld [vmem:[%s2473_s8 + $0xa8] sm:$0xff]  }
  0x19   : > { %2080 = vmatpush3.bf16.msra.mxu1 %v2260_v10  ;;  %2017 = vmatprep.subr.bf16.mxu0 %v2261_v11  ;;  %v2277_v27 = vld [vmem:[%s2473_s8 + $0x70] sm:$0xff]   ;;  %v2281_v31 = vld [vmem:[%s2473_s8 + $0x78] sm:$0xff]  }
  0x1a   : > { %2081 = vmatprep.subr.bf16.mxu1 %v2262_v12  ;;  %v2278_v28 = vld [vmem:[%s2473_s8 + $0xf0] sm:$0xff]   ;;  %v2282_v32 = vld [vmem:[%s2473_s8 + $0xf8] sm:$0xff]  }
  0x1b   : > { %v2279_v29 = vld [vmem:[%s2473_s8 + $0x30] sm:$0xff]   ;;  %v2283_v34 = vld [vmem:[%s2473_s8 + $0x38] sm:$0xff]  }
  0x1c   : > { %2018 = vmatpush3.bf16.msra.mxu0 %v2263_v13  ;;  %v2280_v30 = vld [vmem:[%s2473_s8 + $0xb0] sm:$0xff]   ;;  %v2284_v36 = vld [vmem:[%s2473_s8 + $0xb8] sm:$0xff]   ;;  %s2538_s8 = scalar_lea.vmem %s3042_s1, %s2225_s27 }
  0x1d   : > { %2082 = vmatpush3.bf16.msra.mxu1 %v2264_v14  ;;  %2019 = vmatprep.subr.bf16.mxu0 %v2265_v15  ;;  %v379_v47 = vld [vmem:[%s2538_s8] sm:$0xff]  ;;  %v380_v48 = vld [vmem:[%s2538_s8 + $0x8] sm:$0xff]  ;;  %v381_v5 = vld [vmem:[%s2538_s8 + $0x10] sm:$0xff] }
  0x1e   : > { %2083 = vmatprep.subr.bf16.mxu1 %v2266_v16  ;;  %v2554_v49 = vpack.c.bf16 %v380_v48, %v379_v47  ;;  %v2329_v2 = vld [vmem:[%s3043_s2 + $0xec] ss:$16 sps:$4 sm:$0xff]   ;;  %v2331_v3 = vld [vmem:[%s3043_s2 + $0xe0] ss:$16 sps:$4 sm:$0xff]   ;;  %v2332_v4 = vld [vmem:[%s3043_s2 + $0xe8] ss:$16 sps:$4 sm:$0xff]  }
  0x1f   : > { %v382_v6 = vld [vmem:[%s2538_s8 + $0x18] sm:$0xff]  ;;  %v383_v8 = vld [vmem:[%s2538_s8 + $0x20] sm:$0xff]  ;;  %v384_v9 = vld [vmem:[%s2538_s8 + $0x28] sm:$0xff] }
  0x20   : > { %2020 = vmatpush3.bf16.msra.mxu0 %v2267_v17  ;;  %v2614_v7 = vpack.c.bf16 %v382_v6, %v381_v5  ;;  %v2620_v10 = vpack.c.bf16 %v384_v9, %v383_v8  ;;  %v385_v11 = vld [vmem:[%s2538_s8 + $0x30] sm:$0xff]  ;;  %v386_v12 = vld [vmem:[%s2538_s8 + $0x38] sm:$0xff]  ;;  %v387_v14 = vld [vmem:[%s2538_s8 + $0x40] sm:$0xff] }
  0x21   : > { %2084 = vmatpush3.bf16.msra.mxu1 %v2268_v18  ;;  %2021 = vmatprep.subr.bf16.mxu0 %v2269_v19  ;;  %v2626_v13 = vpack.c.bf16 %v386_v12, %v385_v11  ;;  %v388_v15 = vld [vmem:[%s2538_s8 + $0x48] sm:$0xff]  ;;  %v389_v17 = vld [vmem:[%s2538_s8 + $0x50] sm:$0xff]  ;;  %v390_v18 = vld [vmem:[%s2538_s8 + $0x58] sm:$0xff] }
  0x22   : > { %2085 = vmatprep.subr.bf16.mxu1 %v2270_v20  ;;  %v2632_v16 = vpack.c.bf16 %v388_v15, %v387_v14  ;;  %v2638_v19 = vpack.c.bf16 %v390_v18, %v389_v17  ;;  %v391_v20 = vld [vmem:[%s2538_s8 + $0x60] sm:$0xff]  ;;  %v2348_v47 = vld [vmem:[%s3044_s3 + $0x74] ss:$8 sps:$4 sm:$0xff]   ;;  %v2351_v48 = vld [vmem:[%s3044_s3 + $0x70] ss:$8 sps:$4 sm:$0xff]  }
  0x23   : > { %v1526_v9 = vld [vmem:[%s3046_s5 + $0x10] sm:$0xff]  ;;  %v1524_v11 = vld [vmem:[%s3046_s5] sm:$0xff]  ;;  %v1527_v15 = vld [vmem:[%s3046_s5 + $0x18] sm:$0xff] }
  0x24   : > { %2022 = vmatpush3.bf16.msra.mxu0 %v2271_v21  ;;  %v392_v21 = vld [vmem:[%s2538_s8 + $0x68] sm:$0xff]  ;;  %1560 = vperm.xlu1 %2252, %v1526_v9  }
  0x25   : > { %2086 = vmatpush3.bf16.msra.mxu1 %v2272_v22  ;;  %2023 = vmatprep.subr.bf16.mxu0 %v2273_v23  ;;  %v2644_v22 = vpack.c.bf16 %v392_v21, %v391_v20  ;;  %v393_v23 = vld [vmem:[%s2538_s8 + $0x70] sm:$0xff]  ;;  %v1525_v21 = vld [vmem:[%s3046_s5 + $0x8] sm:$0xff] }
  0x26   : > { %2087 = vmatprep.subr.bf16.mxu1 %v2274_v24  ;;  %v394_v24 = vld [vmem:[%s2538_s8 + $0x78] sm:$0xff]  ;;  %1550 = vperm.xlu0 %2251, %v1524_v11  }
  0x28   : > { %2024 = vmatpush3.bf16.msra.mxu0 %v2275_v25  ;;  %v2650_v25 = vpack.c.bf16 %v394_v24, %v393_v23  ;;  %1565 = vperm.xlu1 %2252, %v1527_v15   ;;  %v1537_v15 = vld [vmem:[%s3046_s5 + $0x68] sm:$0xff] }
  0x29   : > { %2088 = vmatpush3.bf16.msra.mxu1 %v2276_v26  ;;  %2025 = vmatprep.subr.bf16.mxu0 %v2277_v27  ;;  %v395_v26 = vld [vmem:[%s2538_s8 + $0x80] sm:$0xff]  ;;  %v396_v27 = vld [vmem:[%s2538_s8 + $0x88] sm:$0xff] }
  0x2a   : > { %2089 = vmatprep.subr.bf16.mxu1 %v2278_v28  ;;  %v2656_v28 = vpack.c.bf16 %v396_v27, %v395_v26  ;;  %1555 = vperm.xlu0 %2251, %v1525_v21  }
  0x2c   : > { %2026 = vmatpush3.bf16.msra.mxu0 %v2279_v29  ;;  %v397_v29 = vld [vmem:[%s2538_s8 + $0x90] sm:$0xff] }
  0x2d   : > { %2090 = vmatpush3.bf16.msra.mxu1 %v2280_v30  ;;  %2027 = vmatprep.subr.bf16.mxu0 %v2281_v31  ;;  %v398_v30 = vld [vmem:[%s2538_s8 + $0x98] sm:$0xff] }
  0x2e   : > { %2091 = vmatprep.subr.bf16.mxu1 %v2282_v32  ;;  %v2662_v31 = vpack.c.bf16 %v398_v30, %v397_v29  ;;  %v399_v32 = vld [vmem:[%s2538_s8 + $0xa0] sm:$0xff] }
  0x30   : > { %2028 = vmatpush3.bf16.msra.mxu0 %v2283_v34 }
  0x31   : > { %2092 = vmatpush3.bf16.msra.mxu1 %v2284_v36  ;;  %v402_v36 = vld [vmem:[%s2538_s8 + $0xb8] sm:$0xff] }
  0x32   : > { %2201 = vmatprep.subr.bf16.mxu1 %v2405_v1 }
  0x33   : > { %832 = vmatmul.mubr.bf16.vlgmr.msra.gmra.mrb[0].mxu0 %v2285_v33  ;;  %v400_v33 = vld [vmem:[%s2538_s8 + $0xa8] sm:$0xff] }
  0x34   : > { %929 = vmatmul.mubr.bf16.vlgmr.msra.gmra.mrb[0].mxu1 %v2288_v35  ;;  %839 = vmatprep.mubr.bf16.mxu0 %v2291_v37  ;;  %v2668_v34 = vpack.c.bf16 %v400_v33, %v399_v32  ;;  %v401_v35 = vld [vmem:[%s2538_s8 + $0xb0] sm:$0xff] }
  0x35   : > { %936 = vmatprep.mubr.bf16.mxu1 %v2293_v38  ;;  %2213 = vmatpush1.bf16.msra.mxu1 %v2554_v49  ;;  %v2674_v37 = vpack.c.bf16 %v402_v36, %v401_v35  ;;  %v2335_v38 = vld [vmem:[%s3044_s3 + $0x34] ss:$8 sps:$4 sm:$0xff]   ;;  %v1529_v35 = vld [vmem:[%s3046_s5 + $0x28] sm:$0xff] }
  0x36   : > { %2202 = vmatprep.subr.bf16.mxu1 %v2405_v1  ;;  %1575 = vperm.xlu1 %2252, %v1529_v35  }
  0x39   : > { %2214 = vmatpush1.bf16.msra.mxu1 %v2614_v7 }
  0x3a   : > { %2203 = vmatprep.subr.bf16.mxu1 %v2405_v1 }
  0x3b   : > { %840 = vmatmul.mubr.bf16.gmra.mrb[4].mxu0 %v2295_v39  ;;  %v2333_v39 = vld [vmem:[%s3044_s3 + $0x30] ss:$8 sps:$4 sm:$0xff]  }
  0x3c   : > { %937 = vmatmul.mubr.bf16.gmra.mrb[4].mxu1 %v2296_v40  ;;  %847 = vmatprep.mubr.bf16.mxu0 %v2297_v41  ;;  %v2336_v40 = vld [vmem:[%s3044_s3 + $0x44] ss:$8 sps:$4 sm:$0xff]   ;;  %v2338_v41 = vld [vmem:[%s3044_s3 + $0x40] ss:$8 sps:$4 sm:$0xff]  }
  0x3d   : > { %944 = vmatprep.mubr.bf16.mxu1 %v2299_v42  ;;  %2215 = vmatpush1.bf16.msra.mxu1 %v2620_v10  ;;  %v2339_v42 = vld [vmem:[%s3044_s3 + $0x54] ss:$8 sps:$4 sm:$0xff]  }
  0x3e   : > { %2204 = vmatprep.subr.bf16.mxu1 %v2405_v1 }
  0x41   : > { %2216 = vmatpush1.bf16.msra.mxu1 %v2626_v13 }
  0x42   : > { %2205 = vmatprep.subr.bf16.mxu1 %v2405_v1 }
  0x43   : > { %848 = vmatmul.mubr.bf16.gmra.mrb[8].mxu0 %v2301_v43  ;;  %v2341_v43 = vld [vmem:[%s3044_s3 + $0x50] ss:$8 sps:$4 sm:$0xff]  }
  0x44   : > { %945 = vmatmul.mubr.bf16.gmra.mrb[8].mxu1 %v2302_v44  ;;  %855 = vmatprep.mubr.bf16.mxu0 %v2303_v45  ;;  %v2342_v44 = vld [vmem:[%s3045_s4] sm:$0xff]  }
  0x45   : > { %952 = vmatprep.mubr.bf16.mxu1 %v2305_v46  ;;  %2217 = vmatpush1.bf16.msra.mxu1 %v2632_v16  ;;  %v2343_v45 = vld [vmem:[%s3044_s3 + $0x64] ss:$8 sps:$4 sm:$0xff]   ;;  %v2346_v46 = vld [vmem:[%s3044_s3 + $0x60] ss:$8 sps:$4 sm:$0xff]  }
  0x46   : > { %2206 = vmatprep.subr.bf16.mxu1 %v2405_v1 }
  0x49   : > { %2218 = vmatpush1.bf16.msra.mxu1 %v2638_v19 }
  0x4a   : > { %2207 = vmatprep.subr.bf16.mxu1 %v2405_v1 }
  0x4b   : > { %856 = vmatmul.mubr.bf16.gmra.mrb[12].mxu0 %v2307_v50  ;;  %v2353_v50 = vld [vmem:[%s3044_s3 + $0x84] ss:$8 sps:$4 sm:$0xff]  }
  0x4c   : > { %953 = vmatmul.mubr.bf16.gmra.mrb[12].mxu1 %v2308_v51  ;;  %863 = vmatprep.mubr.bf16.mxu0 %v2309_v52  ;;  %v2356_v51 = vld [vmem:[%s3044_s3 + $0x80] ss:$8 sps:$4 sm:$0xff]   ;;  %v2358_v52 = vld [vmem:[%s3044_s3 + $0x94] ss:$8 sps:$4 sm:$0xff]  }
  0x4d   : > { %960 = vmatprep.mubr.bf16.mxu1 %v2311_v53  ;;  %2219 = vmatpush1.bf16.msra.mxu1 %v2644_v22  ;;  %v2361_v53 = vld [vmem:[%s3044_s3 + $0x90] ss:$8 sps:$4 sm:$0xff]  }
  0x4e   : > { %2208 = vmatprep.subr.bf16.mxu1 %v2405_v1 }
  0x51   : > { %2220 = vmatpush1.bf16.msra.mxu1 %v2650_v25 }
  0x52   : > { %2209 = vmatprep.subr.bf16.mxu1 %v2405_v1 }
  0x53   : > { %864 = vmatmul.mubr.bf16.gmra.mrb[16].mxu0 %v2313_v54  ;;  %v2363_v54 = vld [vmem:[%s3044_s3 + $0xa4] ss:$8 sps:$4 sm:$0xff]  }
  0x54   : > { %961 = vmatmul.mubr.bf16.gmra.mrb[16].mxu1 %v2314_v55  ;;  %871 = vmatprep.mubr.bf16.mxu0 %v2315_v56  ;;  %v2366_v55 = vld [vmem:[%s3044_s3 + $0xa0] ss:$8 sps:$4 sm:$0xff]   ;;  %v2368_v56 = vld [vmem:[%s3044_s3 + $0xb4] ss:$8 sps:$4 sm:$0xff]  }
  0x55   : > { %968 = vmatprep.mubr.bf16.mxu1 %v2317_v57  ;;  %2221 = vmatpush1.bf16.msra.mxu1 %v2656_v28  ;;  %v2371_v57 = vld [vmem:[%s3044_s3 + $0xb0] ss:$8 sps:$4 sm:$0xff]  }
  0x56   : > { %2210 = vmatprep.subr.bf16.mxu1 %v2405_v1 }
  0x59   : > { %2222 = vmatpush1.bf16.msra.mxu1 %v2662_v31 }
  0x5a   : > { %2211 = vmatprep.subr.bf16.mxu1 %v2405_v1 }
  0x5b   : > { %872 = vmatmul.mubr.bf16.gmra.mrb[20].mxu0 %v2319_v58 }
  0x5c   : > { %969 = vmatmul.mubr.bf16.gmra.mrb[20].mxu1 %v2320_v59  ;;  %879 = vmatprep.mubr.bf16.mxu0 %v2321_v60 }
  0x5d   : > { %976 = vmatprep.mubr.bf16.mxu1 %v2323_v61  ;;  %2223 = vmatpush1.bf16.msra.mxu1 %v2668_v34 }
  0x5e   : > { %2212 = vmatprep.subr.bf16.mxu1 %v2405_v1 }
  0x61   : > { %2224 = vmatpush1.bf16.msra.mxu1 %v2674_v37 }
  0x63   : > { %880 = vmatmul.mubr.bf16.gmra.mrb[24].mxu0 %v2325_v62 }
  0x64   : > { %977 = vmatmul.mubr.bf16.gmra.mrb[24].mxu1 %v2326_v63  ;;  %887 = vmatprep.mubr.bf16.mxu0 %v2327_v0 }
  0x65   : > { %984 = vmatprep.mubr.bf16.mxu1 %v2329_v2 }
  0x6b   : > { %888 = vmatmul.mubr.bf16.gmra.mrb[28].mxu0 %v2331_v3 }
  0x6c   : > { %985 = vmatmul.mubr.bf16.gmra.mrb[28].mxu1 %v2332_v4  ;;  %2177 = vmatprep.mubr.bf16.mxu0 %v2342_v44 }
  0x6d   : > { %2001 = vmatprep.mubr.msk.bf16.mxu1 %vm1358_vm0, %v2335_v38 }
  0x74   : > { %1452 = vmatmul.mubr.bf16.vlgmr.msra.gmra.mrb[32].mxu1 %v2333_v39  ;;  %v1528_v39 = vld [vmem:[%s3046_s5 + $0x20] sm:$0xff] }
  0x75   : > { %2002 = vmatprep.mubr.msk.bf16.mxu1 %vm1358_vm0, %v2336_v40  ;;  %1570 = vperm.xlu0 %2251, %v1528_v39  }
  0x7c   : > { %1460 = vmatmul.mubr.bf16.gmra.mrb[36].mxu1 %v2338_v41 }
  0x7d   : > { %2003 = vmatprep.mubr.msk.bf16.mxu1 %vm1358_vm0, %v2339_v42  ;;  %v1531_v42 = vld [vmem:[%s3046_s5 + $0x38] sm:$0xff] }
  0x7e   : > { %1585 = vperm.xlu1 %2252, %v1531_v42   ;;  %v1541_v42 = vld [vmem:[%s3046_s5 + $0x88] sm:$0xff] }
  0x84   : > { %1468 = vmatmul.mubr.bf16.gmra.mrb[40].mxu1 %v2341_v43 }
  0x85   : > { %2004 = vmatprep.mubr.msk.bf16.mxu1 %vm1358_vm0, %v2343_v45 }
  0x8c   : > { %1476 = vmatmul.mubr.bf16.gmra.mrb[44].mxu1 %v2346_v46  ;;  %v1530_v46 = vld [vmem:[%s3046_s5 + $0x30] sm:$0xff] }
  0x8d   : > { %2005 = vmatprep.mubr.msk.bf16.mxu1 %vm1358_vm0, %v2348_v47  ;;  %1580 = vperm.xlu0 %2251, %v1530_v46  }
  0x94   : > { %1484 = vmatmul.mubr.bf16.gmra.mrb[48].mxu1 %v2351_v48 }
  0x95   : > { %2006 = vmatprep.mubr.msk.bf16.mxu1 %vm1358_vm0, %v2353_v50 }
  0x9c   : > { %1492 = vmatmul.mubr.bf16.gmra.mrb[52].mxu1 %v2356_v51 }
  0x9d   : > { %2007 = vmatprep.mubr.msk.bf16.mxu1 %vm1358_vm0, %v2358_v52 }
  0xa4   : > { %1500 = vmatmul.mubr.bf16.gmra.mrb[56].mxu1 %v2361_v53 }
  0xa5   : > { %2008 = vmatprep.mubr.msk.bf16.mxu1 %vm1358_vm0, %v2363_v54 }
  0xac   : > { %1508 = vmatmul.mubr.bf16.gmra.mrb[60].mxu1 %v2366_v55 }
  0xad   : > { %2009 = vmatprep.mubr.msk.bf16.mxu1 %vm1358_vm0, %v2368_v56  ;;  %v1533_v56 = vld [vmem:[%s3046_s5 + $0x48] sm:$0xff] }
  0xae   : > { %1595 = vperm.xlu1 %2252, %v1533_v56  }
  0xb4   : > { %1516 = vmatmul.mubr.bf16.gmra.mrb[64].mxu1 %v2371_v57 }
 0x106   : > { %v2029_v58 = vpop.f32.mrb[0].mxu0 }
 0x107   : > { %v2093_v59 = vpop.f32.mrb[0].mxu1  ;;  %v2030_v60 = vpop.f32.mrb[1].mxu0 }
 0x108   : > { %v2031_v61 = vadd.f32 %v2030_v60, %v2029_v58  ;;  %v2094_v62 = vpop.f32.mrb[1].mxu1  ;;  %v2032_v63 = vpop.f32.mrb[2].mxu0 }
 0x109   : > { %v2095_v0 = vadd.f32 %v2094_v62, %v2093_v59  ;;  %v2096_v2 = vpop.f32.mrb[2].mxu1  ;;  %v2033_v3 = vpop.f32.mrb[3].mxu0  ;;  %v1532_v59 = vld [vmem:[%s3046_s5 + $0x40] sm:$0xff]  ;;  %v1535_v62 = vld [vmem:[%s3046_s5 + $0x58] sm:$0xff] }
 0x10a   : > { %v2034_v4 = vadd.f32 %v2033_v3, %v2032_v63  ;;  %v2097_v5 = vpop.f32.mrb[3].mxu1  ;;  %1590 = vperm.xlu0 %2251, %v1532_v59   ;;  %v1534_v3 = vld [vmem:[%s3046_s5 + $0x50] sm:$0xff]  ;;  %1605 = vperm.xlu1 %2252, %v1535_v62   ;;  %v1545_v62 = vld [vmem:[%s3046_s5 + $0xa8] sm:$0xff] }
 0x10b   : > { %v931_v6 = vadd.f32 %v2095_v0, %v2031_v61  ;;  %v2098_v8 = vadd.f32 %v2097_v5, %v2096_v2 }
 0x10d   : > { %v934_v12 = vadd.f32 %v2098_v8, %v2034_v4 }
 0x10e   : > { %v2035_v14 = vpop.f32.mrb[4].mxu0  ;;  %1600 = vperm.xlu0 %2251, %v1534_v3   ;;  %1615 = vperm.xlu1 %2252, %v1537_v15  }
 0x10f   : > { %v2099_v17 = vpop.f32.mrb[4].mxu1  ;;  %v2036_v18 = vpop.f32.mrb[5].mxu0  ;;  %v1041_v20 = vpack.c.bf16 %v934_v12, %v931_v6 }
 0x110   : > { %v2037_v23 = vadd.f32 %v2036_v18, %v2035_v14  ;;  %v2100_v24 = vpop.f32.mrb[5].mxu1  ;;  %v2038_v26 = vpop.f32.mrb[6].mxu0 }
 0x111   : > { %v2101_v27 = vadd.f32 %v2100_v24, %v2099_v17  ;;  %v2102_v29 = vpop.f32.mrb[6].mxu1  ;;  %2161 = vmatprep.subr.bf16.mxu0 %v1041_v20  ;;  %v2039_v30 = vpop.f32.mrb[7].mxu0  ;;  %v1539_v24 = vld [vmem:[%s3046_s5 + $0x78] sm:$0xff] }
 0x112   : > { %v2040_v32 = vadd.f32 %v2039_v30, %v2038_v26  ;;  %v2103_v33 = vpop.f32.mrb[7].mxu1  ;;  %2162 = vmatpush3.bf16.msra.mxu0 %v1041_v20  ;;  %v1536_v20 = vld [vmem:[%s3046_s5 + $0x60] sm:$0xff]  ;;  %v1538_v30 = vld [vmem:[%s3046_s5 + $0x70] sm:$0xff]  ;;  %1625 = vperm.xlu1 %2252, %v1539_v24  }
 0x113   : > { %v939_v36 = vadd.f32 %v2101_v27, %v2037_v23  ;;  %v2104_v38 = vadd.f32 %v2103_v33, %v2102_v29  ;;  %1610 = vperm.xlu0 %2251, %v1536_v20  }
 0x115   : > { %v942_v40 = vadd.f32 %v2104_v38, %v2040_v32 }
 0x116   : > { %v2041_v41 = vpop.f32.mrb[8].mxu0  ;;  %1635 = vperm.xlu1 %2252, %v1541_v42  }
 0x117   : > { %v2105_v43 = vpop.f32.mrb[8].mxu1  ;;  %v2042_v44 = vpop.f32.mrb[9].mxu0  ;;  %v1042_v45 = vpack.c.bf16 %v942_v40, %v939_v36  ;;  %1620 = vperm.xlu0 %2251, %v1538_v30  }
 0x118   : > { %v2043_v47 = vadd.f32 %v2042_v44, %v2041_v41  ;;  %v2106_v48 = vpop.f32.mrb[9].mxu1  ;;  %v2044_v50 = vpop.f32.mrb[10].mxu0 }
 0x119   : > { %v2107_v51 = vadd.f32 %v2106_v48, %v2105_v43  ;;  %v2108_v52 = vpop.f32.mrb[10].mxu1  ;;  %2163 = vmatprep.subr.bf16.mxu0 %v1042_v45  ;;  %v2045_v53 = vpop.f32.mrb[11].mxu0  ;;  %v1543_v48 = vld [vmem:[%s3046_s5 + $0x98] sm:$0xff] }
 0x11a   : > { %v2046_v54 = vadd.f32 %v2045_v53, %v2044_v50  ;;  %v2109_v55 = vpop.f32.mrb[11].mxu1  ;;  %2164 = vmatpush3.bf16.msra.mxu0 %v1042_v45  ;;  %v1540_v45 = vld [vmem:[%s3046_s5 + $0x80] sm:$0xff]  ;;  %v1542_v53 = vld [vmem:[%s3046_s5 + $0x90] sm:$0xff]  ;;  %1645 = vperm.xlu1 %2252, %v1543_v48   ;;  %v2345_v48 = vld [vmem:[%s3045_s4 + $0x8] sm:$0xff]  }
 0x11b   : > { %v947_v57 = vadd.f32 %v2107_v51, %v2043_v47  ;;  %v2110_v58 = vadd.f32 %v2109_v55, %v2108_v52  ;;  %1630 = vperm.xlu0 %2251, %v1540_v45  }
 0x11d   : > { %v950_v60 = vadd.f32 %v2110_v58, %v2046_v54 }
 0x11e   : > { %v2047_v61 = vpop.f32.mrb[12].mxu0  ;;  %1655 = vperm.xlu1 %2252, %v1545_v62  }
 0x11f   : > { %v2111_v63 = vpop.f32.mrb[12].mxu1  ;;  %v2048_v0 = vpop.f32.mrb[13].mxu0  ;;  %v1043_v2 = vpack.c.bf16 %v950_v60, %v947_v57  ;;  %1640 = vperm.xlu0 %2251, %v1542_v53  }
 0x120   : > { %v2049_v4 = vadd.f32 %v2048_v0, %v2047_v61  ;;  %v2112_v5 = vpop.f32.mrb[13].mxu1  ;;  %v2050_v6 = vpop.f32.mrb[14].mxu0 }
 0x121   : > { %v2113_v8 = vadd.f32 %v2112_v5, %v2111_v63  ;;  %v2114_v9 = vpop.f32.mrb[14].mxu1  ;;  %2165 = vmatprep.subr.bf16.mxu0 %v1043_v2  ;;  %v2051_v11 = vpop.f32.mrb[15].mxu0  ;;  %v1547_v5 = vld [vmem:[%s3046_s5 + $0xb8] sm:$0xff] }
 0x122   : > { %v2052_v12 = vadd.f32 %v2051_v11, %v2050_v6  ;;  %v2115_v14 = vpop.f32.mrb[15].mxu1  ;;  %2166 = vmatpush3.bf16.msra.mxu0 %v1043_v2  ;;  %v1544_v2 = vld [vmem:[%s3046_s5 + $0xa0] sm:$0xff]  ;;  %v1546_v11 = vld [vmem:[%s3046_s5 + $0xb0] sm:$0xff]  ;;  %1665 = vperm.xlu1 %2252, %v1547_v5  }
 0x123   : > { %v955_v17 = vadd.f32 %v2113_v8, %v2049_v4  ;;  %v2116_v18 = vadd.f32 %v2115_v14, %v2114_v9  ;;  %1650 = vperm.xlu0 %2251, %v1544_v2  }
 0x125   : > { %v958_v21 = vadd.f32 %v2116_v18, %v2052_v12 }
 0x126   : > { %v2053_v23 = vpop.f32.mrb[16].mxu0 }
 0x127   : > { %v2117_v26 = vpop.f32.mrb[16].mxu1  ;;  %v2054_v27 = vpop.f32.mrb[17].mxu0  ;;  %v1044_v29 = vpack.c.bf16 %v958_v21, %v955_v17  ;;  %1660 = vperm.xlu0 %2251, %v1546_v11  }
 0x128   : > { %v2055_v32 = vadd.f32 %v2054_v27, %v2053_v23  ;;  %v2118_v33 = vpop.f32.mrb[17].mxu1  ;;  %v2056_v35 = vpop.f32.mrb[18].mxu0 }
 0x129   : > { %v2119_v36 = vadd.f32 %v2118_v33, %v2117_v26  ;;  %v2120_v38 = vpop.f32.mrb[18].mxu1  ;;  %2167 = vmatprep.subr.bf16.mxu0 %v1044_v29  ;;  %v2057_v39 = vpop.f32.mrb[19].mxu0 }
 0x12a   : > { %v2058_v40 = vadd.f32 %v2057_v39, %v2056_v35  ;;  %v2121_v41 = vpop.f32.mrb[19].mxu1  ;;  %2168 = vmatpush3.bf16.msra.mxu0 %v1044_v29 }
 0x12b   : > { %v963_v43 = vadd.f32 %v2119_v36, %v2055_v32  ;;  %v2122_v44 = vadd.f32 %v2121_v41, %v2120_v38 }
 0x12d   : > { %v966_v46 = vadd.f32 %v2122_v44, %v2058_v40 }
 0x12e   : > { %v2059_v47 = vpop.f32.mrb[20].mxu0 }
 0x12f   : > { %v2123_v50 = vpop.f32.mrb[20].mxu1  ;;  %v2060_v51 = vpop.f32.mrb[21].mxu0  ;;  %v1045_v52 = vpack.c.bf16 %v966_v46, %v963_v43 }
 0x130   : > { %v2061_v54 = vadd.f32 %v2060_v51, %v2059_v47  ;;  %v2124_v55 = vpop.f32.mrb[21].mxu1  ;;  %v2062_v56 = vpop.f32.mrb[22].mxu0  ;;  %v2350_v51 = vld [vmem:[%s3045_s4 + $0x18] sm:$0xff]  }
 0x131   : > { %v2125_v57 = vadd.f32 %v2124_v55, %v2123_v50  ;;  %v2126_v58 = vpop.f32.mrb[22].mxu1  ;;  %2169 = vmatprep.subr.bf16.mxu0 %v1045_v52  ;;  %v2063_v59 = vpop.f32.mrb[23].mxu0  ;;  %v2347_v50 = vld [vmem:[%s3045_s4 + $0x10] sm:$0xff]  }
 0x132   : > { %v2064_v60 = vadd.f32 %v2063_v59, %v2062_v56  ;;  %v2127_v61 = vpop.f32.mrb[23].mxu1  ;;  %2170 = vmatpush3.bf16.msra.mxu0 %v1045_v52  ;;  %v2352_v52 = vld [vmem:[%s3045_s4 + $0x20] sm:$0xff]  }
 0x133   : > { %v971_v63 = vadd.f32 %v2125_v57, %v2061_v54  ;;  %v2128_v0 = vadd.f32 %v2127_v61, %v2126_v58 }
 0x135   : > { %v974_v3 = vadd.f32 %v2128_v0, %v2064_v60 }
 0x136   : > { %v2065_v4 = vpop.f32.mrb[24].mxu0 }
 0x137   : > { %v2129_v6 = vpop.f32.mrb[24].mxu1  ;;  %v2066_v8 = vpop.f32.mrb[25].mxu0  ;;  %v1046_v9 = vpack.c.bf16 %v974_v3, %v971_v63 }
 0x138   : > { %v2067_v12 = vadd.f32 %v2066_v8, %v2065_v4  ;;  %v2130_v14 = vpop.f32.mrb[25].mxu1  ;;  %v2068_v15 = vpop.f32.mrb[26].mxu0 }
 0x139   : > { %v2131_v17 = vadd.f32 %v2130_v14, %v2129_v6  ;;  %v2132_v18 = vpop.f32.mrb[26].mxu1  ;;  %2171 = vmatprep.subr.bf16.mxu0 %v1046_v9  ;;  %v2069_v20 = vpop.f32.mrb[27].mxu0 }
 0x13a   : > { %v2070_v21 = vadd.f32 %v2069_v20, %v2068_v15  ;;  %v2133_v23 = vpop.f32.mrb[27].mxu1  ;;  %2172 = vmatpush3.bf16.msra.mxu0 %v1046_v9 }
 0x13b   : > { %v979_v24 = vadd.f32 %v2131_v17, %v2067_v12  ;;  %v2134_v26 = vadd.f32 %v2133_v23, %v2132_v18 }
 0x13d   : > { %v982_v27 = vadd.f32 %v2134_v26, %v2070_v21 }
 0x13e   : > { %v2071_v29 = vpop.f32.mrb[28].mxu0 }
 0x13f   : > { %v2135_v30 = vpop.f32.mrb[28].mxu1  ;;  %v2072_v32 = vpop.f32.mrb[29].mxu0  ;;  %v1047_v33 = vpack.c.bf16 %v982_v27, %v979_v24 }
 0x140   : > { %v2073_v35 = vadd.f32 %v2072_v32, %v2071_v29  ;;  %v2136_v36 = vpop.f32.mrb[29].mxu1  ;;  %v2074_v38 = vpop.f32.mrb[30].mxu0 }
 0x141   : > { %v2137_v39 = vadd.f32 %v2136_v36, %v2135_v30  ;;  %v2138_v40 = vpop.f32.mrb[30].mxu1  ;;  %2173 = vmatprep.subr.bf16.mxu0 %v1047_v33  ;;  %v2075_v41 = vpop.f32.mrb[31].mxu0 }
 0x142   : > { %v2076_v42 = vadd.f32 %v2075_v41, %v2074_v38  ;;  %v2139_v43 = vpop.f32.mrb[31].mxu1  ;;  %2174 = vmatpush3.bf16.msra.mxu0 %v1047_v33  ;;  %v2925_v36 = vpop.permute.xlu0 %1550 }
 0x143   : > { %v987_v44 = vadd.f32 %v2137_v39, %v2073_v35  ;;  %v2140_v45 = vadd.f32 %v2139_v43, %v2138_v40  ;;  %v2927_v38 = vpop.permute.xlu1 %1560 }
 0x145   : > { %v990_v46 = vadd.f32 %v2140_v45, %v2076_v42 }
 0x146   : > { %v2929_v39 = vpop.permute.xlu0 %1555 }
 0x147   : > { %v1048_v47 = vpack.c.bf16 %v990_v46, %v987_v44  ;;  %v1453_v53 = vpop.f32.mrb[32].mxu1  ;;  %v2931_v40 = vpop.permute.xlu1 %1565 }
 0x148   : > { %v1455_v54 = vpop.f32.mrb[33].mxu1 }
 0x149   : > { %2175 = vmatprep.subr.bf16.mxu0 %v1048_v47  ;;  %v1456_v55 = vpop.f32.mrb[34].mxu1 }
 0x14a   : > { %2176 = vmatpush3.bf16.msra.mxu0 %v1048_v47  ;;  %v1458_v56 = vpop.f32.mrb[35].mxu1  ;;  %v2933_v41 = vpop.permute.xlu0 %1570 }
 0x14b   : > { %1395 = vmatprep.subr.bf16.mxu0 %v2405_v1  ;;  %v2935_v42 = vpop.permute.xlu1 %1575 }
 0x14d   : > { %2178 = vmatmul.mubr.bf16.vlgmr.msra.gmra.mrb[32].mxu0 %v2345_v48 }
 0x14e   : > { %1396 = vmatpush1.bf16.msra.mxu0 %v2554_v49  ;;  %2181 = vmatprep.mubr.bf16.mxu0 %v2347_v50  ;;  %v2355_v49 = vld [vmem:[%s3045_s4 + $0x28] sm:$0xff]   ;;  %v1581_v43 = vpop.permute.xlu0 %1580 }
 0x14f   : > { %1397 = vmatprep.subr.bf16.mxu0 %v2405_v1  ;;  %v2893_v57 = vpop.f32.mrb[36].mxu1  ;;  %v1586_v44 = vpop.permute.xlu1 %1585 }
 0x150   : > { %v1463_v58 = vpop.f32.mrb[37].mxu1 }
 0x151   : > { %v2895_v59 = vpop.f32.mrb[38].mxu1 }
 0x152   : > { %1398 = vmatpush1.bf16.msra.mxu0 %v2614_v7  ;;  %v2357_v7 = vld [vmem:[%s3045_s4 + $0x30] sm:$0xff]   ;;  %v1466_v60 = vpop.f32.mrb[39].mxu1 }
 0x153   : > { %1399 = vmatprep.subr.bf16.mxu0 %v2405_v1  ;;  %v1596_v48 = vpop.permute.xlu1 %1595 }
 0x155   : > { %2182 = vmatmul.mubr.bf16.gmra.mrb[36].mxu0 %v2350_v51 }
 0x156   : > { %1400 = vmatpush1.bf16.msra.mxu0 %v2620_v10  ;;  %2185 = vmatprep.mubr.bf16.mxu0 %v2352_v52  ;;  %v2360_v10 = vld [vmem:[%s3045_s4 + $0x38] sm:$0xff]  }
 0x157   : > { %1401 = vmatprep.subr.bf16.mxu0 %v2405_v1  ;;  %v2897_v61 = vpop.f32.mrb[40].mxu1 }
 0x158   : > { %v1471_v62 = vpop.f32.mrb[41].mxu1 }
 0x159   : > { %v2899_v63 = vpop.f32.mrb[42].mxu1 }
 0x15a   : > { %1402 = vmatpush1.bf16.msra.mxu0 %v2626_v13  ;;  %v2362_v13 = vld [vmem:[%s3045_s4 + $0x40] sm:$0xff]   ;;  %v1474_v0 = vpop.f32.mrb[43].mxu1 }
 0x15b   : > { %1403 = vmatprep.subr.bf16.mxu0 %v2405_v1 }
 0x15d   : > { %2186 = vmatmul.mubr.bf16.gmra.mrb[40].mxu0 %v2355_v49 }
 0x15e   : > { %1404 = vmatpush1.bf16.msra.mxu0 %v2632_v16  ;;  %2189 = vmatprep.mubr.bf16.mxu0 %v2357_v7  ;;  %v2365_v16 = vld [vmem:[%s3045_s4 + $0x48] sm:$0xff]  }
 0x15f   : > { %1405 = vmatprep.subr.bf16.mxu0 %v2405_v1  ;;  %v2901_v2 = vpop.f32.mrb[44].mxu1 }
 0x160   : > { %v1479_v3 = vpop.f32.mrb[45].mxu1 }
 0x161   : > { %v2903_v4 = vpop.f32.mrb[46].mxu1 }
 0x162   : > { %1406 = vmatpush1.bf16.msra.mxu0 %v2638_v19  ;;  %v2367_v19 = vld [vmem:[%s3045_s4 + $0x50] sm:$0xff]   ;;  %v1482_v5 = vpop.f32.mrb[47].mxu1 }
 0x163   : > { %1407 = vmatprep.subr.bf16.mxu0 %v2405_v1 }
 0x165   : > { %2190 = vmatmul.mubr.bf16.gmra.mrb[44].mxu0 %v2360_v10 }
 0x166   : > { %1408 = vmatpush1.bf16.msra.mxu0 %v2644_v22  ;;  %2193 = vmatprep.mubr.bf16.mxu0 %v2362_v13  ;;  %v2370_v22 = vld [vmem:[%s3045_s4 + $0x58] sm:$0xff]  }
 0x167   : > { %1409 = vmatprep.subr.bf16.mxu0 %v2405_v1  ;;  %v2905_v6 = vpop.f32.mrb[48].mxu1 }
 0x168   : > { %v1487_v8 = vpop.f32.mrb[49].mxu1 }
 0x169   : > { %v2907_v9 = vpop.f32.mrb[50].mxu1 }
 0x16a   : > { %1410 = vmatpush1.bf16.msra.mxu0 %v2650_v25  ;;  %v2374_v25 = vld [vmem:[%s3044_s3 + $0x4] ss:$8 sps:$4 sm:$0xff]   ;;  %v1490_v11 = vpop.f32.mrb[51].mxu1 }
 0x16b   : > { %1411 = vmatprep.subr.bf16.mxu0 %v2405_v1 }
 0x16d   : > { %2194 = vmatmul.mubr.bf16.gmra.mrb[48].mxu0 %v2365_v16 }
 0x16e   : > { %1412 = vmatpush1.bf16.msra.mxu0 %v2656_v28  ;;  %2197 = vmatprep.mubr.bf16.mxu0 %v2367_v19  ;;  %v2372_v28 = vld [vmem:[%s3044_s3] ss:$8 sps:$4 sm:$0xff]  }
 0x16f   : > { %1413 = vmatprep.subr.bf16.mxu0 %v2405_v1  ;;  %v2909_v12 = vpop.f32.mrb[52].mxu1 }
 0x170   : > { %v1495_v14 = vpop.f32.mrb[53].mxu1 }
 0x171   : > { %v2911_v15 = vpop.f32.mrb[54].mxu1 }
 0x172   : > { %1414 = vmatpush1.bf16.msra.mxu0 %v2662_v31  ;;  %v2375_v31 = vld [vmem:[%s3044_s3 + $0x14] ss:$8 sps:$4 sm:$0xff]   ;;  %v1498_v17 = vpop.f32.mrb[55].mxu1 }
 0x173   : > { %1415 = vmatprep.subr.bf16.mxu0 %v2405_v1 }
 0x175   : > { %2198 = vmatmul.mubr.bf16.gmra.mrb[52].mxu0 %v2370_v22 }
 0x176   : > { %1416 = vmatpush1.bf16.msra.mxu0 %v2668_v34  ;;  %1998 = vmatprep.mubr.msk.bf16.mxu0 %vm1358_vm0, %v2374_v25  ;;  %v2377_v34 = vld [vmem:[%s3044_s3 + $0x10] ss:$8 sps:$4 sm:$0xff]  }
 0x177   : > { %1417 = vmatprep.subr.bf16.mxu0 %v2405_v1  ;;  %v2378_v1 = vld [vmem:[%s3044_s3 + $0x24] ss:$8 sps:$4 sm:$0xff]   ;;  %v2913_v18 = vpop.f32.mrb[56].mxu1 }
 0x178   : > { %v1503_v20 = vpop.f32.mrb[57].mxu1 }
 0x179   : > { %v2915_v21 = vpop.f32.mrb[58].mxu1 }
 0x17a   : > { %1418 = vmatpush1.bf16.msra.mxu0 %v2674_v37  ;;  %v2380_v37 = vld [vmem:[%s3044_s3 + $0x20] ss:$8 sps:$4 sm:$0xff]   ;;  %v1506_v23 = vpop.f32.mrb[59].mxu1 }
 0x17d   : > { %1428 = vmatmul.mubr.bf16.vlgmr.msra.gmra.mrb[56].mxu0 %v2372_v28 }
 0x17e   : > { %1999 = vmatprep.mubr.msk.bf16.mxu0 %vm1358_vm0, %v2375_v31 }
 0x17f   : > { %v2917_v24 = vpop.f32.mrb[60].mxu1 }
 0x180   : > { %v1511_v26 = vpop.f32.mrb[61].mxu1 }
 0x181   : > { %v2919_v27 = vpop.f32.mrb[62].mxu1 }
 0x182   : > { %v1514_v29 = vpop.f32.mrb[63].mxu1 }
 0x185   : > { %1436 = vmatmul.mubr.bf16.gmra.mrb[60].mxu0 %v2377_v34 }
 0x186   : > { %2000 = vmatprep.mubr.msk.bf16.mxu0 %vm1358_vm0, %v2378_v1 }
 0x187   : > { %v2921_v30 = vpop.f32.mrb[64].mxu1 }
 0x188   : > { %v1519_v32 = vpop.f32.mrb[65].mxu1 }
 0x189   : > { %v2923_v33 = vpop.f32.mrb[66].mxu1  ;;  %v1591_v45 = vpop.permute.xlu0 %1590 }
 0x18a   : > { %v1522_v35 = vpop.f32.mrb[67].mxu1  ;;  %v1606_v49 = vpop.permute.xlu1 %1605 }
 0x18d   : > { %1444 = vmatmul.mubr.bf16.gmra.mrb[64].mxu0 %v2380_v37  ;;  %v1601_v52 = vpop.permute.xlu0 %1600 }
 0x18e   : > { %v1616_v1 = vpop.permute.xlu1 %1615 }
 0x192   : > { %v1611_v28 = vpop.permute.xlu0 %1610  ;;  %v1626_v11 = vpop.permute.xlu1 %1625 }
 0x196   : > { %v1621_v60 = vpop.permute.xlu0 %1620 }
 0x220   : > { %v2937_v46 = vpop.f32.mrb[32].mxu0 }
 0x221   : > { %v2939_v47 = vpop.f32.mrb[33].mxu0 }
 0x222   : > { %v2941_v50 = vpop.f32.mrb[34].mxu0 }
 0x223   : > { %v2943_v51 = vpop.f32.mrb[35].mxu0 }
 0x228   : > { %v2183_v7 = vpop.f32.mrb[36].mxu0 }
 0x229   : > { %v1454_v10 = vadd.f32 %v2183_v7, %v1453_v53  ;;  %v2945_v13 = vpop.f32.mrb[37].mxu0 }
 0x22a   : > { %v2184_v16 = vpop.f32.mrb[38].mxu0 }
 0x22b   : > { %v1674_v19 = vadd.f32 %v1581_v43, %v1454_v10  ;;  %v1457_v22 = vadd.f32 %v2184_v16, %v1456_v55  ;;  %v2947_v25 = vpop.f32.mrb[39].mxu0 }
 0x22d   : > { %vm1698_vm1 = vcmp.ge.f32.partialorder %v1674_v19, 0.0  ;;  %v1722_v31 = vmul.f32 0.01, %v1674_v19  ;;  %v1675_v34 = vadd.f32 %v1586_v44, %v1457_v22 }
 0x22f   : > { %v1746_v37 = vsel %vm1698_vm1, %v1674_v19, %v1722_v31  ;;  %vm1699_vm2 = vcmp.ge.f32.partialorder %v1675_v34, 0.0  ;;  %v1723_v53 = vmul.f32 0.01, %v1675_v34 }
 0x230   : > { %1770 = vst.msk [vmem:[%s2954_s29 + $0x30] sm:$0xff] %vm1358_vm0, %v1746_v37  ;;  %v2187_v54 = vpop.f32.mrb[40].mxu0 }
 0x231   : > { %v1747_v55 = vsel %vm1699_vm2, %v1675_v34, %v1723_v53  ;;  %v1470_v56 = vadd.f32 %v2187_v54, %v2897_v61  ;;  %v1187_v58 = vpop.f32.mrb[41].mxu0 }
 0x232   : > { %1771 = vst.msk [vmem:[%s2954_s29 + $0x38] sm:$0xff] %vm1358_vm0, %v1747_v55  ;;  %v1462_v62 = vadd.f32 %v2893_v57, %v1187_v58  ;;  %v2188_v0 = vpop.f32.mrb[42].mxu0 }
 0x233   : > { %v1678_v3 = vadd.f32 %v1601_v52, %v1470_v56  ;;  %v1473_v5 = vadd.f32 %v2188_v0, %v2899_v63  ;;  %v1190_v8 = vpop.f32.mrb[43].mxu0  ;;  %v1631_v63 = vpop.permute.xlu0 %1630 }
 0x234   : > { %v1676_v14 = vadd.f32 %v1591_v45, %v1462_v62  ;;  %v1465_v17 = vadd.f32 %v2895_v59, %v1190_v8  ;;  %v1636_v52 = vpop.permute.xlu1 %1635 }
 0x235   : > { %vm1702_vm3 = vcmp.ge.f32.partialorder %v1678_v3, 0.0  ;;  %v1726_v20 = vmul.f32 0.01, %v1678_v3  ;;  %v1679_v61 = vadd.f32 %v1606_v49, %v1473_v5 }
 0x236   : > { %vm1700_vm4 = vcmp.ge.f32.partialorder %v1676_v14, 0.0  ;;  %v1724_v23 = vmul.f32 0.01, %v1676_v14  ;;  %v1677_v26 = vadd.f32 %v1596_v48, %v1465_v17 }
 0x237   : > { %v1750_v29 = vsel %vm1702_vm3, %v1678_v3, %v1726_v20  ;;  %vm1703_vm5 = vcmp.ge.f32.partialorder %v1679_v61, 0.0  ;;  %v1727_v57 = vmul.f32 0.01, %v1679_v61  ;;  %v1641_v37 = vpop.permute.xlu0 %1640 }
 0x238   : > { %1774 = vst.msk [vmem:[%s2954_s29 + $0x50] sm:$0xff] %vm1358_vm0, %v1750_v29  ;;  %v1748_v32 = vsel %vm1700_vm4, %v1676_v14, %v1724_v23  ;;  %vm1701_vm6 = vcmp.ge.f32.partialorder %v1677_v26, 0.0  ;;  %v1725_v35 = vmul.f32 0.01, %v1677_v26  ;;  %v2191_v43 = vpop.f32.mrb[44].mxu0  ;;  %v1646_v56 = vpop.permute.xlu1 %1645 }
 0x239   : > { %1772 = vst.msk [vmem:[%s2954_s29 + $0x40] sm:$0xff] %vm1358_vm0, %v1748_v32  ;;  %v1751_v59 = vsel %vm1703_vm5, %v1679_v61, %v1727_v57  ;;  %v1486_v44 = vadd.f32 %v2191_v43, %v2905_v6  ;;  %v1203_v45 = vpop.f32.mrb[45].mxu0 }
 0x23a   : > { %1775 = vst.msk [vmem:[%s2954_s29 + $0x58] sm:$0xff] %vm1358_vm0, %v1751_v59  ;;  %v1749_v48 = vsel %vm1701_vm6, %v1677_v26, %v1725_v35  ;;  %v1478_v49 = vadd.f32 %v2901_v2, %v1203_v45  ;;  %v2192_v7 = vpop.f32.mrb[46].mxu0 }
 0x23b   : > { %1773 = vst.msk [vmem:[%s2954_s29 + $0x48] sm:$0xff] %vm1358_vm0, %v1749_v48  ;;  %v1682_v10 = vadd.f32 %v1621_v60, %v1486_v44  ;;  %v1489_v16 = vadd.f32 %v2192_v7, %v2907_v9  ;;  %v1206_v19 = vpop.f32.mrb[47].mxu0  ;;  %v1651_v14 = vpop.permute.xlu0 %1650 }
 0x23c   : > { %v1680_v22 = vadd.f32 %v1611_v28, %v1478_v49  ;;  %v1481_v31 = vadd.f32 %v2903_v4, %v1206_v19  ;;  %v1656_v23 = vpop.permute.xlu1 %1655 }
 0x23d   : > { %vm1706_vm7 = vcmp.ge.f32.partialorder %v1682_v10, 0.0  ;;  %v1730_v6 = vmul.f32 0.01, %v1682_v10  ;;  %v1683_v34 = vadd.f32 %v1626_v11, %v1489_v16 }
 0x23e   : > { %vm1704_vm8 = vcmp.ge.f32.partialorder %v1680_v22, 0.0  ;;  %v1728_v53 = vmul.f32 0.01, %v1680_v22  ;;  %v1681_v2 = vadd.f32 %v1616_v1, %v1481_v31 }
 0x23f   : > { %v1754_v54 = vsel %vm1706_vm7, %v1682_v10, %v1730_v6  ;;  %vm1707_vm9 = vcmp.ge.f32.partialorder %v1683_v34, 0.0  ;;  %v1731_v55 = vmul.f32 0.01, %v1683_v34  ;;  %v1661_v59 = vpop.permute.xlu0 %1660 }
 0x240   : > { %1778 = vst.msk [vmem:[%s2954_s29 + $0x70] sm:$0xff] %vm1358_vm0, %v1754_v54  ;;  %v1752_v9 = vsel %vm1704_vm8, %v1680_v22, %v1728_v53  ;;  %vm1705_vm10 = vcmp.ge.f32.partialorder %v1681_v2, 0.0  ;;  %v1729_v28 = vmul.f32 0.01, %v1681_v2  ;;  %v2195_v4 = vpop.f32.mrb[48].mxu0  ;;  %v1666_v10 = vpop.permute.xlu1 %1665 }
 0x241   : > { %1776 = vst.msk [vmem:[%s2954_s29 + $0x60] sm:$0xff] %vm1358_vm0, %v1752_v9  ;;  %v1755_v58 = vsel %vm1707_vm9, %v1683_v34, %v1731_v55  ;;  %v1502_v60 = vadd.f32 %v2195_v4, %v2913_v18  ;;  %v1219_v62 = vpop.f32.mrb[49].mxu0 }
 0x242   : > { %1779 = vst.msk [vmem:[%s2954_s29 + $0x78] sm:$0xff] %vm1358_vm0, %v1755_v58  ;;  %v1753_v1 = vsel %vm1705_vm10, %v1681_v2, %v1729_v28  ;;  %v1494_v0 = vadd.f32 %v2909_v12, %v1219_v62  ;;  %v2196_v3 = vpop.f32.mrb[50].mxu0 }
 0x243   : > { %1777 = vst.msk [vmem:[%s2954_s29 + $0x68] sm:$0xff] %vm1358_vm0, %v1753_v1  ;;  %v1686_v5 = vadd.f32 %v1641_v37, %v1502_v60  ;;  %v1505_v8 = vadd.f32 %v2196_v3, %v2915_v21  ;;  %v1222_v11 = vpop.f32.mrb[51].mxu0 }
 0x244   : > { %v1684_v17 = vadd.f32 %v1631_v63, %v1494_v0  ;;  %v1497_v20 = vadd.f32 %v2911_v15, %v1222_v11 }
 0x245   : > { %vm1710_vm11 = vcmp.ge.f32.partialorder %v1686_v5, 0.0  ;;  %v1734_v18 = vmul.f32 0.01, %v1686_v5  ;;  %v1687_v61 = vadd.f32 %v1646_v56, %v1505_v8 }
 0x246   : > { %vm1708_vm12 = vcmp.ge.f32.partialorder %v1684_v17, 0.0  ;;  %v1732_v12 = vmul.f32 0.01, %v1684_v17  ;;  %v1685_v26 = vadd.f32 %v1636_v52, %v1497_v20 }
 0x247   : > { %v1758_v29 = vsel %vm1710_vm11, %v1686_v5, %v1734_v18  ;;  %vm1711_vm13 = vcmp.ge.f32.partialorder %v1687_v61, 0.0  ;;  %v1735_v57 = vmul.f32 0.01, %v1687_v61 }
 0x248   : > { %1782 = vst.msk [vmem:[%s2954_s29 + $0x90] sm:$0xff] %vm1358_vm0, %v1758_v29  ;;  %v1756_v21 = vsel %vm1708_vm12, %v1684_v17, %v1732_v12  ;;  %vm1709_vm14 = vcmp.ge.f32.partialorder %v1685_v26, 0.0  ;;  %v1733_v63 = vmul.f32 0.01, %v1685_v26  ;;  %v2199_v32 = vpop.f32.mrb[52].mxu0 }
 0x249   : > { %1780 = vst.msk [vmem:[%s2954_s29 + $0x80] sm:$0xff] %vm1358_vm0, %v1756_v21  ;;  %v1759_v15 = vsel %vm1711_vm13, %v1687_v61, %v1735_v57  ;;  %v1518_v35 = vadd.f32 %v2199_v32, %v2921_v30  ;;  %v1235_v43 = vpop.f32.mrb[53].mxu0 }
 0x24a   : > { %1783 = vst.msk [vmem:[%s2954_s29 + $0x98] sm:$0xff] %vm1358_vm0, %v1759_v15  ;;  %v1757_v44 = vsel %vm1709_vm14, %v1685_v26, %v1733_v63  ;;  %v1510_v45 = vadd.f32 %v2917_v24, %v1235_v43  ;;  %v2200_v52 = vpop.f32.mrb[54].mxu0 }
 0x24b   : > { %1781 = vst.msk [vmem:[%s2954_s29 + $0x88] sm:$0xff] %vm1358_vm0, %v1757_v44  ;;  %v1690_v48 = vadd.f32 %v1661_v59, %v1518_v35  ;;  %v1521_v49 = vadd.f32 %v2200_v52, %v2923_v33  ;;  %v1238_v7 = vpop.f32.mrb[55].mxu0 }
 0x24c   : > { %v1688_v16 = vadd.f32 %v1651_v14, %v1510_v45  ;;  %v1513_v30 = vadd.f32 %v2919_v27, %v1238_v7 }
 0x24d   : > { %vm1714_vm15 = vcmp.ge.f32.partialorder %v1690_v48, 0.0  ;;  %v1738_v19 = vmul.f32 0.01, %v1690_v48  ;;  %v1691_v22 = vadd.f32 %v1666_v10, %v1521_v49 }
 0x24e   : > { %vm1712_vm1 = vcmp.ge.f32.partialorder %v1688_v16, 0.0  ;;  %v1736_v31 = vmul.f32 0.01, %v1688_v16  ;;  %v1689_v24 = vadd.f32 %v1656_v23, %v1513_v30 }
 0x24f   : > { %v1762_v6 = vsel %vm1714_vm15, %v1690_v48, %v1738_v19  ;;  %vm1715_vm2 = vcmp.ge.f32.partialorder %v1691_v22, 0.0  ;;  %v1739_v34 = vmul.f32 0.01, %v1691_v22 }
 0x250   : > { %1786 = vst.msk [vmem:[%s2954_s29 + $0xb0] sm:$0xff] %vm1358_vm0, %v1762_v6  ;;  %v1760_v33 = vsel %vm1712_vm1, %v1688_v16, %v1736_v31  ;;  %vm1713_vm3 = vcmp.ge.f32.partialorder %v1689_v24, 0.0  ;;  %v1737_v37 = vmul.f32 0.01, %v1689_v24  ;;  %v1429_v53 = vpop.f32.mrb[56].mxu0 }
 0x251   : > { %1784 = vst.msk [vmem:[%s2954_s29 + $0xa0] sm:$0xff] %vm1358_vm0, %v1760_v33  ;;  %v1763_v27 = vsel %vm1715_vm2, %v1691_v22, %v1739_v34  ;;  %v1430_v2 = vadd.f32 %v1429_v53, %v2939_v47  ;;  %v1431_v54 = vpop.f32.mrb[57].mxu0 }
 0x252   : > { %1787 = vst.msk [vmem:[%s2954_s29 + $0xb8] sm:$0xff] %vm1358_vm0, %v1763_v27  ;;  %v1761_v55 = vsel %vm1713_vm3, %v1689_v24, %v1737_v37  ;;  %v1432_v56 = vpop.f32.mrb[58].mxu0 }
 0x253   : > { %1785 = vst.msk [vmem:[%s2954_s29 + $0xa8] sm:$0xff] %vm1358_vm0, %v1761_v55  ;;  %v1668_v9 = vadd.f32 %v2925_v36, %v1430_v2  ;;  %v1433_v28 = vadd.f32 %v1432_v56, %v2943_v51  ;;  %v1434_v4 = vpop.f32.mrb[59].mxu0 }
 0x255   : > { %vm1692_vm4 = vcmp.ge.f32.partialorder %v1668_v9, 0.0  ;;  %v1716_v58 = vmul.f32 0.01, %v1668_v9  ;;  %v1669_v60 = vadd.f32 %v2929_v39, %v1433_v28 }
 0x257   : > { %v1740_v62 = vsel %vm1692_vm4, %v1668_v9, %v1716_v58  ;;  %vm1693_vm5 = vcmp.ge.f32.partialorder %v1669_v60, 0.0  ;;  %v1717_v47 = vmul.f32 0.01, %v1669_v60 }
 0x258   : > { %1764 = vst.msk [vmem:[%s2954_s29] sm:$0xff] %vm1358_vm0, %v1740_v62  ;;  %v1437_v1 = vpop.f32.mrb[60].mxu0 }
 0x259   : > { %v1741_v0 = vsel %vm1693_vm5, %v1669_v60, %v1717_v47  ;;  %v1438_v3 = vadd.f32 %v2937_v46, %v1437_v1  ;;  %v1439_v5 = vpop.f32.mrb[61].mxu0 }
 0x25a   : > { %1765 = vst.msk [vmem:[%s2954_s29 + $0x8] sm:$0xff] %vm1358_vm0, %v1741_v0  ;;  %v1440_v36 = vpop.f32.mrb[62].mxu0 }
 0x25b   : > { %v1670_v51 = vadd.f32 %v2927_v38, %v1438_v3  ;;  %v1441_v8 = vadd.f32 %v2941_v50, %v1440_v36  ;;  %v1442_v39 = vpop.f32.mrb[63].mxu0 }
 0x25d   : > { %vm1694_vm6 = vcmp.ge.f32.partialorder %v1670_v51, 0.0  ;;  %v1718_v11 = vmul.f32 0.01, %v1670_v51  ;;  %v1671_v14 = vadd.f32 %v2931_v40, %v1441_v8 }
 0x25f   : > { %v1742_v17 = vsel %vm1694_vm6, %v1670_v51, %v1718_v11  ;;  %vm1695_vm7 = vcmp.ge.f32.partialorder %v1671_v14, 0.0  ;;  %v1719_v20 = vmul.f32 0.01, %v1671_v14 }
 0x260   : > { %1766 = vst.msk [vmem:[%s2954_s29 + $0x10] sm:$0xff] %vm1358_vm0, %v1742_v17  ;;  %v1445_v46 = vpop.f32.mrb[64].mxu0 }
 0x261   : > { %v1743_v18 = vsel %vm1695_vm7, %v1671_v14, %v1719_v20  ;;  %v1446_v61 = vadd.f32 %v1445_v46, %v2945_v13  ;;  %v1447_v23 = vpop.f32.mrb[65].mxu0 }
 0x262   : > { %1767 = vst.msk [vmem:[%s2954_s29 + $0x18] sm:$0xff] %vm1358_vm0, %v1743_v18  ;;  %v1448_v38 = vpop.f32.mrb[66].mxu0 }
 0x263   : > { %v1672_v50 = vadd.f32 %v2933_v41, %v1446_v61  ;;  %v1449_v12 = vadd.f32 %v1448_v38, %v2947_v25  ;;  %v1450_v40 = vpop.f32.mrb[67].mxu0 }
 0x265   : > { %vm1696_vm8 = vcmp.ge.f32.partialorder %v1672_v50, 0.0  ;;  %v1720_v26 = vmul.f32 0.01, %v1672_v50  ;;  %v1673_v29 = vadd.f32 %v2935_v42, %v1449_v12 }
 0x267   : > { %v1744_v57 = vsel %vm1696_vm8, %v1672_v50, %v1720_v26  ;;  %vm1697_vm9 = vcmp.ge.f32.partialorder %v1673_v29, 0.0  ;;  %v1721_v21 = vmul.f32 0.01, %v1673_v29 }
 0x268   : > { %1768 = vst.msk [vmem:[%s2954_s29 + $0x20] sm:$0xff] %vm1358_vm0, %v1744_v57 }
 0x269   : > { %v1745_v63 = vsel %vm1697_vm9, %v1673_v29, %v1721_v21 }
 0x26a   : > { %1769 = vst.msk [vmem:[%s2954_s29 + $0x28] sm:$0xff] %vm1358_vm0, %v1745_v63 }
 0x26b PF: > { %s16_s23 = sadd.s32 1, %s2403_s23   ;;  %s3048_s21 = smov %s2399_s22 }
 0x26c   : > { %p13_p5 = scmp.ge.s32.totalorder %s16_s23, 4   ;;  %s3049_s22 = smov %s3051_s24 }
 0x26e   :  { %15 = sbr.rel (!%p13_p5) target bundleno = 2 (0x2), region = 77 }

</bundles_post_ra>
